<compile_context>
chip_gen: v6e
topology: v6e:2x2x1
jax: 0.10.0
libtpu: 0.0.40
codegen_flags: <defaults>
</compile_context>

<pallas_src>
import functools

import jax
import jax.numpy as jnp
from jax.experimental import pallas as pl
from jax.experimental.pallas import tpu as pltpu

NEG_SLOPE = 0.2
BN_EPS = 1e-5


def _round_up(x, m):
    return ((x + m - 1) // m) * m


# ----------------------------- Pallas kernels --------------------------------

def _conv_act_kernel(w_ref, p_ref, b_ref, o_ref, *, apply_leaky):
    """out^T tile = W @ patches^T tile + bias, optional fused LeakyReLU(0.2).

    Single MXU dot per block (K and C_out fit in one block for every layer);
    accumulation stays in the MXU result path, f32 epilogue, one store.
    """
    y = jnp.dot(w_ref[...], p_ref[...], preferred_element_type=jnp.float32)
    y = y + b_ref[...]
    if apply_leaky:
        y = jnp.where(y >= 0, y, NEG_SLOPE * y)
    o_ref[...] = y


def conv_act(w_p, pT_p, bias_p, *, apply_leaky, tile_m):
    """y^T = W @ patches^T (+bias, +LeakyReLU). Grid over lane (M) tiles only."""
    Cp, Kp = w_p.shape
    Mp = pT_p.shape[1]
    assert Mp % tile_m == 0
    kernel = functools.partial(_conv_act_kernel, apply_leaky=apply_leaky)
    return pl.pallas_call(
        kernel,
        out_shape=jax.ShapeDtypeStruct((Cp, Mp), jnp.float32),
        grid_spec=pltpu.PrefetchScalarGridSpec(
            num_scalar_prefetch=0,
            grid=(Mp // tile_m,),
            in_specs=[
                pl.BlockSpec((Cp, Kp), lambda i: (0, 0)),       # whole weight
                pl.BlockSpec((Kp, tile_m), lambda i: (0, i)),   # patches^T tile
                pl.BlockSpec((Cp, 1), lambda i: (0, 0)),        # bias column
            ],
            out_specs=pl.BlockSpec((Cp, tile_m), lambda i: (0, i)),
        ),
        compiler_params=pltpu.CompilerParams(
            dimension_semantics=("parallel",)),
    )(w_p, pT_p, bias_p)


def _conv_bn_act_kernel(w_ref, p_ref, gamma_ref, beta_ref, o_ref, *, inv_m):
    """Fused conv + BatchNorm (training-mode batch stats) + LeakyReLU(0.2).

    Whole M sits in one block, so per-channel statistics are global. Padded
    lanes of y are exactly zero (zero-padded patches, no conv bias on BN
    layers), so unmasked lane reductions equal the real-M reductions.
    """
    y = jnp.dot(w_ref[...], p_ref[...], preferred_element_type=jnp.float32)
    s = jnp.sum(y, axis=1, keepdims=True)            # XLU lane reduction
    sq = jnp.sum(y * y, axis=1, keepdims=True)
    mean = s * inv_m
    var = jnp.maximum(sq * inv_m - mean * mean, 0.0)  # guard cancellation
    scale = gamma_ref[...] * jax.lax.rsqrt(var + BN_EPS)
    shift = beta_ref[...] - mean * scale
    z = y * scale + shift
    o_ref[...] = jnp.where(z >= 0, z, NEG_SLOPE * z)


def conv_bn_act(w_p, pT_p, gamma_p, beta_p, *, real_m):
    Cp, Kp = w_p.shape
    Mp = pT_p.shape[1]
    # Whole-layer working set is ~1.3 MiB at these sizes — far under the
    # scoped-VMEM default on v5e/v6e/v7x, so a single block is the right tile.
    # TODO(synk): add an M-tiled two-pass path (partial sums fused into the
    #             conv epilogue + separate affine kernel) for activations too
    #             large for one VMEM block.
    kernel = functools.partial(_conv_bn_act_kernel, inv_m=1.0 / real_m)
    return pl.pallas_call(
        kernel,
        out_shape=jax.ShapeDtypeStruct((Cp, Mp), jnp.float32),
        grid_spec=pltpu.PrefetchScalarGridSpec(
            num_scalar_prefetch=0,
            grid=(1,),
            in_specs=[
                pl.BlockSpec((Cp, Kp), lambda i: (0, 0)),
                pl.BlockSpec((Kp, Mp), lambda i: (0, 0)),
                pl.BlockSpec((Cp, 1), lambda i: (0, 0)),
                pl.BlockSpec((Cp, 1), lambda i: (0, 0)),
            ],
            out_specs=pl.BlockSpec((Cp, Mp), lambda i: (0, 0)),
        ),
        compiler_params=pltpu.CompilerParams(
            dimension_semantics=("arbitrary",)),
    )(w_p, pT_p, gamma_p, beta_p)


# ------------------------------ JAX glue --------------------------------------

def im2col_T(x_cnhw, kh, kw, stride, pad):
    """x: (C, N, H, W) -> patches^T of shape (C*kh*kw, N*OH*OW).

    Row order (c, i, j) matches PyTorch's w.reshape(C_out, C_in*kh*kw) columns.
    """
    C, N, H, W = x_cnhw.shape
    xp = jnp.pad(x_cnhw, ((0, 0), (0, 0), (pad, pad), (pad, pad)))
    OH = (H + 2 * pad - kh) // stride + 1
    OW = (W + 2 * pad - kw) // stride + 1
    taps = []
    for i in range(kh):
        for j in range(kw):
            taps.append(
                xp[:, :, i:i + stride * OH:stride, j:j + stride * OW:stride])
    p = jnp.stack(taps, axis=1)                      # (C, kh*kw, N, OH, OW)
    return p.reshape(C * kh * kw, N * OH * OW), OH, OW


def conv_layer(x_cnhw, w, b, stride, pad, *, bn_params=None, leaky=True):
    N = x_cnhw.shape[1]
    C_out = w.shape[0]
    kh, kw = w.shape[2], w.shape[3]
    patchesT, OH, OW = im2col_T(x_cnhw, kh, kw, stride, pad)
    K, M = patchesT.shape

    Kp = _round_up(K, 128)      # lane axis of W / sublane axis of patches^T
    Mp = _round_up(M, 128)      # lane axis of patches^T and of the output
    Cp = _round_up(C_out, 8)    # sublane axis of W / output

    # bf16 MXU operands; f32 accumulation + f32 epilogue happen in-kernel.
    pT_p = jnp.zeros((Kp, Mp), jnp.bfloat16).at[:K, :M].set(
        patchesT.astype(jnp.bfloat16))
    w_p = jnp.zeros((Cp, Kp), jnp.bfloat16).at[:C_out, :K].set(
        w.reshape(C_out, K).astype(jnp.bfloat16))

    if bn_params is None:
        bias = b if b is not None else jnp.zeros((C_out,), jnp.float32)
        bias_p = jnp.zeros((Cp, 1), jnp.float32).at[:C_out, 0].set(bias)
        y = conv_act(w_p, pT_p, bias_p, apply_leaky=leaky, tile_m=Mp)
    else:
        # Invariant: BatchNorm conv layers of this module never carry a bias
        # (use_bias is only set for InstanceNorm), so padded lanes of the conv
        # output are exactly zero and the in-kernel stats need no masking.
        assert b is None and leaky
        gamma, beta = bn_params
        gamma_p = jnp.zeros((Cp, 1), jnp.float32).at[:C_out, 0].set(gamma)
        beta_p = jnp.zeros((Cp, 1), jnp.float32).at[:C_out, 0].set(beta)
        y = conv_bn_act(w_p, pT_p, gamma_p, beta_p, real_m=M)

    # (C_out, M) is already channel-major: reshape straight back to CNHW.
    return y[:C_out, :M].reshape(C_out, N, OH, OW)


def spectral_normalize(w, key, n_iter=1):
    """SpectralNorm forward semantics: w / sigma with one power iteration."""
    C_out = w.shape[0]
    w_mat = w.reshape(C_out, -1)
    u = jax.random.normal(key, (C_out,), jnp.float32)
    u = u / (jnp.linalg.norm(u) + 1e-12)
    v = None
    for _ in range(n_iter):
        v = w_mat.T @ u
        v = v / (jnp.linalg.norm(v) + 1e-12)
        u = w_mat @ v
        u = u / (jnp.linalg.norm(u) + 1e-12)
    sigma = u @ (w_mat @ v)
    return w / sigma


def init_discriminator_params(key, input_nc=3, ndf=8, n_layers=3):
    kw = 4
    specs = [dict(cin=input_nc, cout=ndf, stride=2, bias=True, bn=False)]
    nf_mult = 1
    for n in range(1, n_layers):
        nf_mult_prev = nf_mult
        nf_mult = min(2 ** n, 8)
        specs.append(dict(cin=ndf * nf_mult_prev, cout=ndf * nf_mult,
                          stride=2, bias=False, bn=True))
    nf_mult_prev = nf_mult
    nf_mult = min(2 ** n_layers, 8)
    specs.append(dict(cin=ndf * nf_mult_prev, cout=ndf * nf_mult,
                      stride=1, bias=False, bn=True))
    specs.append(dict(cin=ndf * nf_mult, cout=1, stride=1, bias=True, bn=False))

    params = []
    for i, s in enumerate(specs):
        key, k_w, k_b, k_u = jax.random.split(key, 4)
        w = 0.02 * jax.random.normal(k_w, (s['cout'], s['cin'], kw, kw),
                                     jnp.float32)
        w = spectral_normalize(w, k_u)
        b = (0.01 * jax.random.normal(k_b, (s['cout'],), jnp.float32)
             if s['bias'] else None)
        bn = ((jnp.ones((s['cout'],), jnp.float32),
               jnp.zeros((s['cout'],), jnp.float32)) if s['bn'] else None)
        params.append(dict(w=w, b=b, bn=bn, stride=s['stride'],
                           last=(i == len(specs) - 1)))
    return params


def nlayer_discriminator_forward(x, params):
    """x: (N, C, H, W). Returns results[1:] (get_intermediate_features=True)."""
    feats = []
    h = jnp.transpose(x, (1, 0, 2, 3))               # internal CNHW layout
    for p in params:
        h = conv_layer(h, p['w'], p['b'], p['stride'], 1,
                       bn_params=p['bn'], leaky=not p['last'])
        feats.append(jnp.transpose(h, (1, 0, 2, 3)))  # NCHW for the caller
    return feats


# Pure-JAX reference for validation (XLA conv, NCHW, f32 HIGHEST precision).
def reference_forward(x, params):
    feats = []
    h = x
    for p in params:
        out = jax.lax.conv_general_dilated(
            h, p['w'], window_strides=(p['stride'], p['stride']),
            padding=((1, 1), (1, 1)),
            dimension_numbers=('NCHW', 'OIHW', 'NCHW'),
            precision=jax.lax.Precision.HIGHEST)
        if p['b'] is not None:
            out = out + p['b'][None, :, None, None]
        if p['bn'] is not None:
            gamma, beta = p['bn']
            mean = out.mean(axis=(0, 2, 3), keepdims=True)
            var = out.var(axis=(0, 2, 3), keepdims=True)
            out = (out - mean) * jax.lax.rsqrt(var + BN_EPS)
            out = out * gamma[None, :, None, None] + beta[None, :, None, None]
        if not p['last']:
            out = jnp.where(out >= 0, out, NEG_SLOPE * out)
        h = out
        feats.append(h)
    return feats


if __name__ == "__main__":
    key = jax.random.PRNGKey(0)
    kx, kp = jax.random.split(key)
    # input_nc=3, ndf=8, n_layers=3, norm=BatchNorm2d, no sigmoid.
    x = jax.random.normal(kx, (2, 3, 32, 32), jnp.float32)
    params = init_discriminator_params(kp, input_nc=3, ndf=8, n_layers=3)

    feats = nlayer_discriminator_forward(x, params)
    feats = [jax.block_until_ready(f) for f in feats]

    ref = reference_forward(x, params)
    for a, r in zip(feats, ref):
        assert a.shape == r.shape, (a.shape, r.shape)
        err = float(jnp.max(jnp.abs(a - r)))
        # bf16 matmul operands across 5 layers -> allow ~3% of feature scale.
        tol = 3e-2 + 3e-2 * float(jnp.max(jnp.abs(r)))
        assert err < tol, f"max abs err {err} (tol {tol})"

    print("KERNEL_OK")
</pallas_src>

<mosaic_0001>
module attributes {stable_mosaic.version = 11 : i64} {
  func.func @_conv_act_kernel(%arg0: i32, %arg1: memref<8x128xbf16, #tpu.memory_space<vmem>>, %arg2: memref<128x512xbf16, #tpu.memory_space<vmem>>, %arg3: memref<8x1xf32, #tpu.memory_space<vmem>>, %arg4: memref<8x512xf32, #tpu.memory_space<vmem>>) attributes {dimension_semantics = [#tpu.dimension_semantics<parallel>], iteration_bounds = array<i64: 1>, scalar_prefetch = 0 : i64, scratch_operands = 0 : i64, tpu.core_type = #tpu.core_type<tc>, window_params = [{pipeline_mode = #tpu.pipeline_mode<synchronous>, transform_indices = @transform_0, window_bounds = array<i64: 8, 128>}, {transform_indices = @transform_1, window_bounds = array<i64: 128, 512>}, {pipeline_mode = #tpu.pipeline_mode<synchronous>, transform_indices = @transform_2, window_bounds = array<i64: 8, 1>}, {transform_indices = @transform_3, window_bounds = array<i64: 8, 512>}]} {
    %c0 = arith.constant 0 : index
    %c0_0 = arith.constant 0 : index
    %0 = vector.load %arg1[%c0, %c0_0] : memref<8x128xbf16, #tpu.memory_space<vmem>>, vector<8x128xbf16>
    %c0_1 = arith.constant 0 : index
    %c0_2 = arith.constant 0 : index
    %1 = vector.load %arg2[%c0_1, %c0_2] : memref<128x512xbf16, #tpu.memory_space<vmem>>, vector<128x512xbf16>
    %cst = arith.constant dense<0.000000e+00> : vector<8x512xf32>
    %2 = tpu.matmul %0, %1, %cst {dimension_numbers = #tpu.dot_dimension_numbers<[1], [0], [0], [1], [0, 0, 1, 1], [], []>} : vector<8x128xbf16>, vector<128x512xbf16>, vector<8x512xf32> -> vector<8x512xf32>
    %c0_3 = arith.constant 0 : index
    %c0_4 = arith.constant 0 : index
    %3 = vector.load %arg3[%c0_3, %c0_4] : memref<8x1xf32, #tpu.memory_space<vmem>>, vector<8x1xf32>
    %4 = vector.broadcast %3 : vector<8x1xf32> to vector<8x512xf32>
    %5 = arith.addf %2, %4 : vector<8x512xf32>
    %cst_5 = arith.constant 0.000000e+00 : f32
    %6 = vector.broadcast %cst_5 : f32 to vector<8x512xf32>
    %7 = arith.cmpf oge, %5, %6 : vector<8x512xf32>
    %cst_6 = arith.constant 2.000000e-01 : f32
    %8 = vector.broadcast %cst_6 : f32 to vector<8x512xf32>
    %9 = arith.mulf %8, %5 : vector<8x512xf32>
    %10 = arith.select %7, %5, %9 : vector<8x512xi1>, vector<8x512xf32>
    %c0_7 = arith.constant 0 : index
    %c0_8 = arith.constant 0 : index
    %11 = vector.load %arg4[%c0_7, %c0_8] : memref<8x512xf32, #tpu.memory_space<vmem>>, vector<8x512xf32>
    tpu.vector_store %arg4[%c0_7, %c0_8], %10 {strides = array<i32>} : memref<8x512xf32, #tpu.memory_space<vmem>>, vector<8x512xf32>,
    return
  }
  func.func @transform_0(%arg0: i32) -> (i32, i32) {
    %c0_i32 = arith.constant 0 : i32
    %c0_i32_0 = arith.constant 0 : i32
    %c0_i32_1 = arith.constant 0 : i32
    return %c0_i32, %c0_i32_0 : i32, i32
  }
  func.func @transform_1(%arg0: i32) -> (i32, i32) {
    %c0_i32 = arith.constant 0 : i32
    %c0_i32_0 = arith.constant 0 : i32
    return %c0_i32, %arg0 : i32, i32
  }
  func.func @transform_2(%arg0: i32) -> (i32, i32) {
    %c0_i32 = arith.constant 0 : i32
    %c0_i32_0 = arith.constant 0 : i32
    %c0_i32_1 = arith.constant 0 : i32
    return %c0_i32, %c0_i32_0 : i32, i32
  }
  func.func @transform_3(%arg0: i32) -> (i32, i32) {
    %c0_i32 = arith.constant 0 : i32
    %c0_i32_0 = arith.constant 0 : i32
    return %c0_i32, %arg0 : i32, i32
  }
}

</mosaic_0001>

<bundles_post_ra>
// kernel: tpu_custom_call.1
= control target key start
LH: loop header
LB: loop body
LE: loop exit
PB: predicated region body
PF: predicated region fallthrough
CT: control target
= control target key end

     0   :  { %8 = vsyncpa [#allocation3], 0  ;;  %s509_s0 = inlined_call_operand.vmem [shape: bf16[8,128], index: 0, kind: input, shape index: {}]   ;;  %s510_s1 = inlined_call_operand.hbm [shape: bf16[128,512], index: 1, kind: input, shape index: {}]   ;;  %s511_s2 = inlined_call_operand.vmem [shape: f32[8,1], index: 2, kind: input, shape index: {}]   ;;  %s512_s3 = inlined_call_operand.hbm [shape: f32[8,512], index: 3, kind: output, shape index: {}]  }
   0x1   :  { %9 = vsyncpa [#allocation4], 0  ;;  %s472_s12 = smov [#allocation2]  }
   0x2   :  { %s17_s13 = sshll.u32 %s472_s12, 4  ;;  %s18_s13 = int_to_ptr.vmem [resolvable:$true] %s17_s13 }
   0x3   :  { %s436_s14 = scalar_lea.vmem %s18_s13, 4096  ;;  %p441_p1 = scmp.lt.s32.totalorder %s18_s13, %s18_s13 }
   0x4   :  { %p437_p0 = scmp.ne.s32.totalorder %s18_s13, %s436_s14  ;;  %p442_p2 = scmp.lt.s32.totalorder %s436_s14, %s436_s14 }
   0x6   :  { %p443_p3 = por %p442_p2, %p441_p1 }
   0x8   :  { %p444_p4 = pnand %p443_p3, %p437_p0 }
   0xa   :  { %447 = shalt.err (!%p444_p4)
}
   0xb   :  { %s473_s15 = smov 256   ;;  %s474_s16 = smov 16  }
   0xc   :  { %23 = dma.hbm_to_vmem [thread:$0]  %s510_s1, 4096, %s18_s13, [#allocation3], %s473_s15, %s473_s15, %s474_s16  }
   0xd   :  { %468 = dma.done.wait [#allocation3], 4096  }
   0xe   :  { %469 = vsyncadd [#allocation3], 4294963200  ;;  %v475_v0 = vmov 0   ;;  %v380_v1 = vld [vmem:[#allocation2 + $0xe4] ss:$16 sps:$4 sm:$0xff]  }
   0xf   :  { %261 = vmatprep.mubr.bf16.mxu0 %v475_v0  ;;  %302 = vmatprep.mubr.bf16.mxu1 %v475_v0  ;;  %v382_v2 = vld [vmem:[#allocation2 + $0xec] ss:$16 sps:$4 sm:$0xff]   ;;  %v384_v3 = vld [vmem:[#allocation2 + $0xe0] ss:$16 sps:$4 sm:$0xff]   ;;  %v385_v4 = vld [vmem:[#allocation2 + $0xe8] ss:$16 sps:$4 sm:$0xff]  }
  0x10   :  { %379 = vset.pattern.permute.xlu0 %v475_v0  ;;  %229 = vmatprep.subr.bf16.mxu0 %v380_v1  ;;  %v386_v5 = vld [vmem:[#allocation2 + $0xc4] ss:$16 sps:$4 sm:$0xff]   ;;  %v388_v6 = vld [vmem:[#allocation2 + $0xcc] ss:$16 sps:$4 sm:$0xff]   ;;  %v390_v7 = vld [vmem:[#allocation2 + $0xc0] ss:$16 sps:$4 sm:$0xff]  }
  0x11   :  { %270 = vmatprep.subr.bf16.mxu1 %v382_v2  ;;  %230 = vmatpush1.bf16.msra.mxu0 %v384_v3  ;;  %v391_v8 = vld [vmem:[#allocation2 + $0xc8] ss:$16 sps:$4 sm:$0xff]   ;;  %v392_v9 = vld [vmem:[#allocation2 + $0xa4] ss:$16 sps:$4 sm:$0xff]   ;;  %v394_v10 = vld [vmem:[#allocation2 + $0xac] ss:$16 sps:$4 sm:$0xff]  }
  0x12   :  { %271 = vmatpush1.bf16.msra.mxu1 %v385_v4  ;;  %231 = vmatprep.subr.bf16.mxu0 %v386_v5  ;;  %v396_v11 = vld [vmem:[#allocation2 + $0xa0] ss:$16 sps:$4 sm:$0xff]   ;;  %v397_v12 = vld [vmem:[#allocation2 + $0xa8] ss:$16 sps:$4 sm:$0xff]   ;;  %v398_v13 = vld [vmem:[#allocation2 + $0x84] ss:$16 sps:$4 sm:$0xff]  }
  0x13   :  { %272 = vmatprep.subr.bf16.mxu1 %v388_v6  ;;  %v400_v14 = vld [vmem:[#allocation2 + $0x8c] ss:$16 sps:$4 sm:$0xff]   ;;  %v402_v15 = vld [vmem:[#allocation2 + $0x80] ss:$16 sps:$4 sm:$0xff]   ;;  %v403_v16 = vld [vmem:[#allocation2 + $0x88] ss:$16 sps:$4 sm:$0xff]  }
  0x14   :  { %v404_v17 = vld [vmem:[#allocation2 + $0x64] ss:$16 sps:$4 sm:$0xff]   ;;  %v406_v18 = vld [vmem:[#allocation2 + $0x6c] ss:$16 sps:$4 sm:$0xff]   ;;  %v408_v19 = vld [vmem:[#allocation2 + $0x60] ss:$16 sps:$4 sm:$0xff]  }
  0x15   :  { %232 = vmatpush1.bf16.msra.mxu0 %v390_v7  ;;  %v409_v20 = vld [vmem:[#allocation2 + $0x68] ss:$16 sps:$4 sm:$0xff]   ;;  %v410_v21 = vld [vmem:[#allocation2 + $0x44] ss:$16 sps:$4 sm:$0xff]   ;;  %v412_v22 = vld [vmem:[#allocation2 + $0x4c] ss:$16 sps:$4 sm:$0xff]  }
  0x16   :  { %273 = vmatpush1.bf16.msra.mxu1 %v391_v8  ;;  %233 = vmatprep.subr.bf16.mxu0 %v392_v9  ;;  %v414_v23 = vld [vmem:[#allocation2 + $0x40] ss:$16 sps:$4 sm:$0xff]   ;;  %v415_v24 = vld [vmem:[#allocation2 + $0x48] ss:$16 sps:$4 sm:$0xff]   ;;  %v416_v25 = vld [vmem:[#allocation2 + $0x24] ss:$16 sps:$4 sm:$0xff]  }
  0x17   :  { %274 = vmatprep.subr.bf16.mxu1 %v394_v10  ;;  %v418_v26 = vld [vmem:[#allocation2 + $0x2c] ss:$16 sps:$4 sm:$0xff]   ;;  %v63_v27 = vld [vmem:[%s511_s2] sm:$0xff]  ;;  %v421_v29 = vld [vmem:[#allocation2 + $0x28] ss:$16 sps:$4 sm:$0xff]   ;;  %s476_s2 = smov [#allocation5]  }
  0x18   :  { %66 = vperm.xlu0 %379, %v63_v27   ;;  %v420_v28 = vld [vmem:[#allocation2 + $0x20] ss:$16 sps:$4 sm:$0xff]   ;;  %v422_v30 = vld [vmem:[#allocation2 + $0x4] ss:$16 sps:$4 sm:$0xff]   ;;  %v424_v31 = vld [vmem:[#allocation2 + $0xc] ss:$16 sps:$4 sm:$0xff]  }
  0x19   :  { %234 = vmatpush1.bf16.msra.mxu0 %v396_v11  ;;  %v426_v32 = vld [vmem:[#allocation2] ss:$16 sps:$4 sm:$0xff]   ;;  %v427_v33 = vld [vmem:[#allocation2 + $0x8] ss:$16 sps:$4 sm:$0xff]   ;;  %s333_s22 = sshll.u32 %s476_s2, 4  ;;  %s334_s22 = int_to_ptr.vmem [resolvable:$true] %s333_s22 }
  0x1a   :  { %275 = vmatpush1.bf16.msra.mxu1 %v397_v12  ;;  %235 = vmatprep.subr.bf16.mxu0 %v398_v13  ;;  %v30_v34 = vld [vmem:[%s509_s0] sm:$0xf]  ;;  %s448_s0 = scalar_lea.vmem %s334_s22, 512  ;;  %p453_p6 = scmp.lt.s32.totalorder %s334_s22, %s334_s22 }
  0x1b   :  { %276 = vmatprep.subr.bf16.mxu1 %v400_v14  ;;  %p449_p5 = scmp.ne.s32.totalorder %s334_s22, %s448_s0  ;;  %p454_p7 = scmp.lt.s32.totalorder %s448_s0, %s448_s0 }
  0x1d   :  { %236 = vmatpush1.bf16.msra.mxu0 %v402_v15  ;;  %p455_p8 = por %p454_p7, %p453_p6 }
  0x1e   :  { %277 = vmatpush1.bf16.msra.mxu1 %v403_v16  ;;  %237 = vmatprep.subr.bf16.mxu0 %v404_v17 }
  0x1f   :  { %278 = vmatprep.subr.bf16.mxu1 %v406_v18  ;;  %p456_p9 = pnand %p455_p8, %p449_p5 }
  0x21   :  { %238 = vmatpush1.bf16.msra.mxu0 %v408_v19 }
  0x22   :  { %279 = vmatpush1.bf16.msra.mxu1 %v409_v20  ;;  %239 = vmatprep.subr.bf16.mxu0 %v410_v21 }
  0x23   :  { %280 = vmatprep.subr.bf16.mxu1 %v412_v22 }
  0x25   :  { %240 = vmatpush1.bf16.msra.mxu0 %v414_v23 }
  0x26   :  { %281 = vmatpush1.bf16.msra.mxu1 %v415_v24  ;;  %241 = vmatprep.subr.bf16.mxu0 %v416_v25 }
  0x27   :  { %282 = vmatprep.subr.bf16.mxu1 %v418_v26 }
  0x29   :  { %242 = vmatpush1.bf16.msra.mxu0 %v420_v28 }
  0x2a   :  { %283 = vmatpush1.bf16.msra.mxu1 %v421_v29  ;;  %243 = vmatprep.subr.bf16.mxu0 %v422_v30 }
  0x2b   :  { %284 = vmatprep.subr.bf16.mxu1 %v424_v31 }
  0x2d   :  { %244 = vmatpush1.bf16.msra.mxu0 %v426_v32 }
  0x2e   :  { %285 = vmatpush1.bf16.msra.mxu1 %v427_v33 }
  0x30   :  { %262 = vmatmul.mubr.bf16.vlgmr.msra.gmra.mxu0 %v30_v34 }
  0x31   :  { %303 = vmatmul.mubr.bf16.vlgmr.msra.gmra.mxu1 %v30_v34 }
  0x93   :  { %v67_v35 = vpop.permute.xlu0 %66 }
  0xf0   :  { %v263_v36 = vpop.f32.mrf.mxu0 }
  0xf1   :  { %v304_v37 = vpop.f32.mrf.mxu1  ;;  %v264_v38 = vadd.f32 %v263_v36, %v67_v35 }
  0xf2   :  { %v305_v39 = vadd.f32 %v304_v37, %v67_v35  ;;  %v265_v40 = vpop.f32.mrf.mxu0 }
  0xf3   :  { %v306_v41 = vpop.f32.mrf.mxu1  ;;  %vm311_vm0 = vcmp.ge.f32.partialorder %v264_v38, 0.0  ;;  %v315_v42 = vmul.f32 0.2, %v264_v38  ;;  %v266_v44 = vadd.f32 %v265_v40, %v67_v35 }
  0xf4   :  { %vm313_vm1 = vcmp.ge.f32.partialorder %v305_v39, 0.0  ;;  %v317_v43 = vmul.f32 0.2, %v305_v39  ;;  %v307_v45 = vadd.f32 %v306_v41, %v67_v35  ;;  %v267_v46 = vpop.f32.mrf.mxu0 }
  0xf5   :  { %v308_v47 = vpop.f32.mrf.mxu1  ;;  %v319_v48 = vsel %vm311_vm0, %v264_v38, %v315_v42  ;;  %vm312_vm2 = vcmp.ge.f32.partialorder %v266_v44, 0.0  ;;  %v316_v50 = vmul.f32 0.2, %v266_v44 }
  0xf6   :  { %v321_v49 = vsel %vm313_vm1, %v305_v39, %v317_v43  ;;  %323 = vst [vmem:[#allocation5] sm:$0xff] %v319_v48  ;;  %vm314_vm3 = vcmp.ge.f32.partialorder %v307_v45, 0.0  ;;  %v318_v51 = vmul.f32 0.2, %v307_v45  ;;  %v268_v52 = vpop.f32.mrf.mxu0 }
  0xf7   :  { %325 = vst [vmem:[#allocation5 + $0x10] sm:$0xff] %v321_v49  ;;  %v309_v53 = vpop.f32.mrf.mxu1  ;;  %v320_v54 = vsel %vm312_vm2, %v266_v44, %v316_v50 }
  0xf8   :  { %v322_v55 = vsel %vm314_vm3, %v307_v45, %v318_v51  ;;  %324 = vst [vmem:[#allocation5 + $0x8] sm:$0xff] %v320_v54 }
  0xf9   :  { %326 = vst [vmem:[#allocation5 + $0x18] sm:$0xff] %v322_v55 }
  0xfa   :  { %459 = shalt.err (!%p456_p9)
}
  0xfb   :  { %336 = dma.vmem_to_hbm [thread:$0]  %s334_s22, 512, %s512_s3, [#allocation4]  }
  0xfc   :  { %470 = dma.done.wait [#allocation4], 512  }
  0xfd   :  { %471 = vsyncadd [#allocation4], 4294966784 }
  0xfe   :  { %340 = vsyncpa [#allocation3], 1 }
  0xff   :  { %341 = vsyncpa [#allocation4], 1 }

</bundles_post_ra>
